<compile_context>
chip_gen: v5e
topology: v5e:2x2
jax: 0.10.0
libtpu: 0.0.40
codegen_flags: <defaults>
</compile_context>

<pallas_src>
import functools

import jax
import jax.numpy as jnp
import numpy as np
from jax import lax
from jax.experimental import pallas as pl
from jax.experimental.pallas import tpu as pltpu


# ----------------------------------------------------------------------------
# Parameter preparation (runs ONCE, outside the jitted forward)
# ----------------------------------------------------------------------------
def prepare_params(params, *, in_channels, i_size, channels, conv_kernel=3,
                   pool_kernel=2):
    """Re-express conv weights as banded 'conv == matmul' matrices (bf16) and the per-task
    decoders as a single lane-blocked matrix so the kernel only issues fat 2-D MXU dots."""
    K = conv_kernel
    P = pool_kernel
    conv_w = [np.asarray(w, np.float32) for w in params["conv_w"]]   # (Co, Ci, K, K)
    conv_b = [np.asarray(b, np.float32) for b in params["conv_b"]]
    dec_w = [np.asarray(w, np.float32) for w in params["dec_w"]]     # (ncls, F)
    dec_b = [np.asarray(b, np.float32) for b in params["dec_b"]]

    meta, m_arrays, b_arrays = [], [], []

    H = W = i_size

    # layer 0 input lanes = w * in_channels + ci (NHWC minor dims merged).  The torch-side
    # zero channel-padding up to `channels` contributes 0 to the conv, so it is simply
    # skipped when building the banded matrix (never materialized).
    def lane_of(w_, c_):
        return w_ * in_channels + c_

    L_in = W * in_channels
    H_in, W_in, Ci = H, W, in_channels

    for li in range(len(conv_w)):
        wl = conv_w[li]
        Co = wl.shape[0]
        Ho, Wo = H_in - K + 1, W_in - K + 1
        Ph, Pw = Ho // P, Wo // P
        mats = []
        for dy in range(K):
            M = np.zeros((L_in, Wo * Co), np.float32)
            for wo in range(Wo):
                for dx in range(K):
                    for ci in range(Ci):
                        for co in range(Co):
                            M[lane_of(wo + dx, ci), wo * Co + co] = wl[co, ci, dy, dx]
            mats.append(M)
        m_arrays.append(np.stack(mats))                      # (K, L_in, Wo*Co)
        b_arrays.append(np.tile(conv_b[li], Wo)[None, :])    # (1, Wo*Co)
        pool_lanes = (Wo - 1) * Co
        meta.append(dict(Ho=Ho, Co=Co, Ph=Ph, pool_lanes=pool_lanes, ntaps=K))

        # after the width-pool, value (w_pooled, c) lives at lane P*w_pooled*Co + c;
        # all other lanes hold garbage and are matched by ZERO rows downstream.
        def lane_of(w_, c_, _Co=Co, _P=P):
            return _P * w_ * _Co + c_

        L_in, H_in, W_in, Ci = pool_lanes, Ph, Pw, Co

    # per-task decoders (torch flatten order: f = c*(Ph*Pw) + i*Pw + j), row-blocked by the
    # final height index i so the kernel can lane-concat the Ph row groups and do ONE dot.
    dec_mats, dec_biases = [], []
    for Wd, bd in zip(dec_w, dec_b):
        ncls = Wd.shape[0]
        D = np.zeros((H_in * L_in, ncls), np.float32)
        for i in range(H_in):
            for j in range(W_in):
                for c in range(Ci):
                    D[i * L_in + lane_of(j, c), :] = Wd[:, c * (H_in * W_in) + i * W_in + j]
        dec_mats.append(D)
        dec_biases.append(bd[None, :])

    arrays = {
        "m": [jnp.asarray(m, jnp.bfloat16) for m in m_arrays],
        "b": [jnp.asarray(b, jnp.float32) for b in b_arrays],
        "dec_m": [jnp.asarray(d, jnp.bfloat16) for d in dec_mats],
        "dec_b": [jnp.asarray(b, jnp.float32) for b in dec_biases],
    }
    return meta, arrays


# ----------------------------------------------------------------------------
# Fused Pallas kernel (whole forward for B_TILE samples per grid step)
# ----------------------------------------------------------------------------
def _make_cnn_kernel(meta, b_tile):
    n_layers = len(meta)
    B = b_tile

    def kernel(x_ref, *refs):
        m_refs = [refs[2 * l] for l in range(n_layers)]
        b_refs = [refs[2 * l + 1] for l in range(n_layers)]
        d_ref = refs[2 * n_layers]
        bd_ref = refs[2 * n_layers + 1]
        o_ref = refs[2 * n_layers + 2]

        # activation rows are (h * B + b); lanes are layer-specific (see prepare_params)
        a = x_ref[0]                                   # (H*B, W*C_in), bf16
        for l, mt in enumerate(meta):
            Ho, Co, Ph = mt["Ho"], mt["Co"], mt["Ph"]
            Lp, K = mt["pool_lanes"], mt["ntaps"]

            # --- conv: K banded MXU matmuls, M = B*Ho, bf16 operands, f32 accumulation ---
            # (row offsets dy*B are 8-aligned for B_TILE % 8 == 0, so value slices are
            #  plain vreg selects, no sublane shuffles)
            z = None
            for dy in range(K):
                d = jnp.dot(a[dy * B:dy * B + Ho * B, :], m_refs[l][dy],
                            preferred_element_type=jnp.float32)
                z = d if z is None else z + d
            z = z + b_refs[l][...]

            # --- 2x2 max-pool, width: shifted-lane max (the stride-2 lane selection is
            #     folded into the next layer's prepared matrix / decoder as zero rows) ---
            zp = jnp.maximum(z[:, :Lp], z[:, Co:Co + Lp])

            # --- 2x2 max-pool, height: vectorized pairwise max over 8-aligned row groups
            #     (no VMEM scratch, no per-row store loop) ---
            pooled = jnp.concatenate(
                [jnp.maximum(zp[(2 * i) * B:(2 * i + 1) * B, :],
                             zp[(2 * i + 1) * B:(2 * i + 2) * B, :])
                 for i in range(Ph)], axis=0)

            # --- ReLU (dropout p=0.5 is the identity in eval mode); bf16 for next MXU pass
            a = jnp.maximum(pooled, 0.0).astype(jnp.bfloat16)

        # --- decoder: lane-concat the Ph row-groups -> single (B, Ph*L) @ (Ph*L, ncls) dot
        Ph_f, L_f = meta[-1]["Ph"], meta[-1]["pool_lanes"]
        feat = jnp.concatenate([a[i * B:(i + 1) * B, :] for i in range(Ph_f)], axis=1)
        out = jnp.dot(feat, d_ref[...], preferred_element_type=jnp.float32) + bd_ref[...]
        o_ref[...] = out.astype(o_ref.dtype)           # dense (B_TILE, ncls) store

    return kernel


# ----------------------------------------------------------------------------
# Forward wrapper (single pallas_call; only a tiny transpose/reshape outside the kernel)
# ----------------------------------------------------------------------------
def cnn_forward(x, arrays, *, meta, task_id, b_tile=8):
    N, C_in, H, W = x.shape
    assert N % b_tile == 0, "batch must be divisible by b_tile"
    assert b_tile % 8 == 0 or b_tile == N, "b_tile must be a multiple of 8 (or == N)"
    T = N // b_tile

    # NCHW -> per-tile (h, b)-interleaved rows with NHWC-merged (w, ci) lanes; one small
    # XLA-side transpose off the hot loop; cast to bf16 once (halves the input DMA).
    x_r = jnp.transpose(x.reshape(T, b_tile, C_in, H, W), (0, 3, 1, 4, 2))
    x_r = x_r.reshape(T, H * b_tile, W * C_in).astype(jnp.bfloat16)

    operands = [x_r]
    in_specs = [pl.BlockSpec((1, H * b_tile, W * C_in), lambda n: (n, 0, 0))]
    for m, b in zip(arrays["m"], arrays["b"]):
        operands += [m, b]
        in_specs += [
            pl.BlockSpec(m.shape, lambda n: (0, 0, 0)),
            pl.BlockSpec(b.shape, lambda n: (0, 0)),
        ]
    d = arrays["dec_m"][task_id]
    bd = arrays["dec_b"][task_id]
    operands += [d, bd]
    in_specs += [
        pl.BlockSpec(d.shape, lambda n: (0, 0)),
        pl.BlockSpec(bd.shape, lambda n: (0, 0)),
    ]
    ncls = bd.shape[1]

    grid_spec = pltpu.PrefetchScalarGridSpec(
        num_scalar_prefetch=0,
        grid=(T,),
        in_specs=in_specs,
        out_specs=pl.BlockSpec((b_tile, ncls), lambda n: (n, 0)),
    )
    out = pl.pallas_call(
        _make_cnn_kernel(meta, b_tile),
        out_shape=jax.ShapeDtypeStruct((N, ncls), jnp.float32),
        grid_spec=grid_spec,
        compiler_params=pltpu.CompilerParams(
            dimension_semantics=("parallel",)),     # v7x: sample-tiles split across TCs
    )(*operands)
    return out


# ----------------------------------------------------------------------------
# Pure-JAX reference (f32, for correctness check)
# ----------------------------------------------------------------------------
def reference_forward(x_nchw, params, task_id, channels):
    n, c = x_nchw.shape[0], x_nchw.shape[1]
    x = jnp.pad(x_nchw, ((0, 0), (0, channels - c), (0, 0), (0, 0)))
    for w, b in zip(params["conv_w"], params["conv_b"]):
        y = lax.conv_general_dilated(
            x, w, window_strides=(1, 1), padding="VALID",
            dimension_numbers=("NCHW", "OIHW", "NCHW"),
            precision=lax.Precision.HIGHEST,
        ) + b[None, :, None, None]
        y = lax.reduce_window(y, -jnp.inf, lax.max, (1, 1, 2, 2), (1, 1, 2, 2), "VALID")
        x = jnp.maximum(y, 0.0)
    feat = x.reshape(n, -1)
    return (jnp.dot(feat, params["dec_w"][task_id].T,
                    precision=lax.Precision.HIGHEST)
            + params["dec_b"][task_id])


# ----------------------------------------------------------------------------
# Main
# ----------------------------------------------------------------------------
if __name__ == "__main__":
    # module config (small):
    i_size = 16
    channels = 4
    depth = 2
    num_classes = 10
    num_tasks = 3
    num_init_tasks = 2          # unused in forward
    conv_kernel = 3
    maxpool_kernel = 2
    padding = 0

    batch = 16                  # small; chosen so B_TILE=8 gives grid=(2,) (both v7x TCs)
    b_tile = 8
    in_channels = 3             # < channels, exercises the F.pad channel padding
    task_id = 1

    # final spatial size (mirror of the torch __init__ arithmetic)
    out_h = i_size
    for _ in range(depth):
        out_h = out_h + 2 * padding - conv_kernel + 1
        out_h = (out_h - maxpool_kernel) // maxpool_kernel + 1
    feat_dim = out_h * out_h * channels

    key = jax.random.PRNGKey(0)
    keys = jax.random.split(key, 2 * depth + 2 * num_tasks + 1)

    conv_w, conv_b = [], []
    for i in range(depth):
        conv_w.append(0.1 * jax.random.normal(
            keys[2 * i], (channels, channels, conv_kernel, conv_kernel), jnp.float32))
        conv_b.append(0.1 * jax.random.normal(keys[2 * i + 1], (channels,), jnp.float32))

    dec_w, dec_b = [], []
    for t in range(num_tasks):
        dec_w.append(0.1 * jax.random.normal(
            keys[2 * depth + 2 * t], (num_classes, feat_dim), jnp.float32))
        dec_b.append(0.1 * jax.random.normal(
            keys[2 * depth + 2 * t + 1], (num_classes,), jnp.float32))

    params = {"conv_w": conv_w, "conv_b": conv_b, "dec_w": dec_w, "dec_b": dec_b}

    # one-time weight preparation (bf16 banded conv matrices, lane-blocked decoder)
    meta, arrays = prepare_params(
        params, in_channels=in_channels, i_size=i_size, channels=channels,
        conv_kernel=conv_kernel, pool_kernel=maxpool_kernel)

    x = jax.random.normal(keys[-1], (batch, in_channels, i_size, i_size), jnp.float32)

    fwd = jax.jit(functools.partial(cnn_forward, meta=meta, task_id=task_id,
                                    b_tile=b_tile))
    out = jax.block_until_ready(fwd(x, arrays))

    ref = jax.block_until_ready(reference_forward(x, params, task_id, channels))
    assert out.shape == (batch, num_classes), out.shape
    # kernel computes at bf16 MXU precision (per perf review) -> bf16-class tolerance
    assert np.allclose(np.asarray(out), np.asarray(ref), atol=2e-2, rtol=2e-2), (
        np.max(np.abs(np.asarray(out) - np.asarray(ref))))

    print("KERNEL_OK")
</pallas_src>

<mosaic_0001>
module attributes {stable_mosaic.version = 11 : i64} {
  func.func @kernel(%arg0: i32, %arg1: memref<1x128x48xbf16, #tpu.memory_space<vmem>>, %arg2: memref<3x48x56xbf16, #tpu.memory_space<vmem>>, %arg3: memref<1x56xf32, #tpu.memory_space<vmem>>, %arg4: memref<3x52x20xbf16, #tpu.memory_space<vmem>>, %arg5: memref<1x20xf32, #tpu.memory_space<vmem>>, %arg6: memref<32x10xbf16, #tpu.memory_space<vmem>>, %arg7: memref<1x10xf32, #tpu.memory_space<vmem>>, %arg8: memref<8x10xf32, #tpu.memory_space<vmem>>) attributes {dimension_semantics = [#tpu.dimension_semantics<parallel>], iteration_bounds = array<i64: 2>, scalar_prefetch = 0 : i64, scratch_operands = 0 : i64, tpu.core_type = #tpu.core_type<tc>, window_params = [{transform_indices = @transform_0, window_bounds = array<i64: 1, 128, 48>}, {pipeline_mode = #tpu.pipeline_mode<synchronous>, transform_indices = @transform_1, window_bounds = array<i64: 3, 48, 56>}, {pipeline_mode = #tpu.pipeline_mode<synchronous>, transform_indices = @transform_2, window_bounds = array<i64: 1, 56>}, {pipeline_mode = #tpu.pipeline_mode<synchronous>, transform_indices = @transform_3, window_bounds = array<i64: 3, 52, 20>}, {pipeline_mode = #tpu.pipeline_mode<synchronous>, transform_indices = @transform_4, window_bounds = array<i64: 1, 20>}, {pipeline_mode = #tpu.pipeline_mode<synchronous>, transform_indices = @transform_5, window_bounds = array<i64: 32, 10>}, {pipeline_mode = #tpu.pipeline_mode<synchronous>, transform_indices = @transform_6, window_bounds = array<i64: 1, 10>}, {transform_indices = @transform_7, window_bounds = array<i64: 8, 10>}]} {
    %c0 = arith.constant 0 : index
    %c0_0 = arith.constant 0 : index
    %c0_1 = arith.constant 0 : index
    %0 = vector.load %arg1[%c0, %c0_0, %c0_1] : memref<1x128x48xbf16, #tpu.memory_space<vmem>>, vector<1x128x48xbf16>
    %1 = vector.shape_cast %0 : vector<1x128x48xbf16> to vector<128x48xbf16>
    %2 = vector.extract_strided_slice %1 {offsets = [0, 0], sizes = [112, 48], strides = [1, 1]} : vector<128x48xbf16> to vector<112x48xbf16>
    %c0_2 = arith.constant 0 : index
    %c0_3 = arith.constant 0 : index
    %c0_4 = arith.constant 0 : index
    %3 = vector.load %arg2[%c0_2, %c0_3, %c0_4] : memref<3x48x56xbf16, #tpu.memory_space<vmem>>, vector<1x48x56xbf16>
    %4 = vector.shape_cast %3 : vector<1x48x56xbf16> to vector<48x56xbf16>
    %cst = arith.constant dense<0.000000e+00> : vector<112x56xf32>
    %5 = tpu.matmul %2, %4, %cst {dimension_numbers = #tpu.dot_dimension_numbers<[1], [0], [0], [1], [0, 0, 1, 1], [], []>} : vector<112x48xbf16>, vector<48x56xbf16>, vector<112x56xf32> -> vector<112x56xf32>
    %6 = vector.extract_strided_slice %1 {offsets = [8, 0], sizes = [112, 48], strides = [1, 1]} : vector<128x48xbf16> to vector<112x48xbf16>
    %c1 = arith.constant 1 : index
    %c0_5 = arith.constant 0 : index
    %c0_6 = arith.constant 0 : index
    %7 = vector.load %arg2[%c1, %c0_5, %c0_6] : memref<3x48x56xbf16, #tpu.memory_space<vmem>>, vector<1x48x56xbf16>
    %8 = vector.shape_cast %7 : vector<1x48x56xbf16> to vector<48x56xbf16>
    %cst_7 = arith.constant dense<0.000000e+00> : vector<112x56xf32>
    %9 = tpu.matmul %6, %8, %cst_7 {dimension_numbers = #tpu.dot_dimension_numbers<[1], [0], [0], [1], [0, 0, 1, 1], [], []>} : vector<112x48xbf16>, vector<48x56xbf16>, vector<112x56xf32> -> vector<112x56xf32>
    %10 = arith.addf %5, %9 : vector<112x56xf32>
    %11 = vector.extract_strided_slice %1 {offsets = [16, 0], sizes = [112, 48], strides = [1, 1]} : vector<128x48xbf16> to vector<112x48xbf16>
    %c2 = arith.constant 2 : index
    %c0_8 = arith.constant 0 : index
    %c0_9 = arith.constant 0 : index
    %12 = vector.load %arg2[%c2, %c0_8, %c0_9] : memref<3x48x56xbf16, #tpu.memory_space<vmem>>, vector<1x48x56xbf16>
    %13 = vector.shape_cast %12 : vector<1x48x56xbf16> to vector<48x56xbf16>
    %cst_10 = arith.constant dense<0.000000e+00> : vector<112x56xf32>
    %14 = tpu.matmul %11, %13, %cst_10 {dimension_numbers = #tpu.dot_dimension_numbers<[1], [0], [0], [1], [0, 0, 1, 1], [], []>} : vector<112x48xbf16>, vector<48x56xbf16>, vector<112x56xf32> -> vector<112x56xf32>
    %15 = arith.addf %10, %14 : vector<112x56xf32>
    %c0_11 = arith.constant 0 : index
    %c0_12 = arith.constant 0 : index
    %16 = vector.load %arg3[%c0_11, %c0_12] : memref<1x56xf32, #tpu.memory_space<vmem>>, vector<1x56xf32>
    %17 = vector.broadcast %16 : vector<1x56xf32> to vector<112x56xf32>
    %18 = arith.addf %15, %17 : vector<112x56xf32>
    %19 = vector.extract_strided_slice %18 {offsets = [0, 0], sizes = [112, 52], strides = [1, 1]} : vector<112x56xf32> to vector<112x52xf32>
    %20 = vector.extract_strided_slice %18 {offsets = [0, 4], sizes = [112, 52], strides = [1, 1]} : vector<112x56xf32> to vector<112x52xf32>
    %21 = arith.maximumf %19, %20 : vector<112x52xf32>
    %22 = vector.extract_strided_slice %21 {offsets = [0, 0], sizes = [8, 52], strides = [1, 1]} : vector<112x52xf32> to vector<8x52xf32>
    %23 = vector.extract_strided_slice %21 {offsets = [8, 0], sizes = [8, 52], strides = [1, 1]} : vector<112x52xf32> to vector<8x52xf32>
    %24 = arith.maximumf %22, %23 : vector<8x52xf32>
    %25 = vector.extract_strided_slice %21 {offsets = [16, 0], sizes = [8, 52], strides = [1, 1]} : vector<112x52xf32> to vector<8x52xf32>
    %26 = vector.extract_strided_slice %21 {offsets = [24, 0], sizes = [8, 52], strides = [1, 1]} : vector<112x52xf32> to vector<8x52xf32>
    %27 = arith.maximumf %25, %26 : vector<8x52xf32>
    %28 = vector.extract_strided_slice %21 {offsets = [32, 0], sizes = [8, 52], strides = [1, 1]} : vector<112x52xf32> to vector<8x52xf32>
    %29 = vector.extract_strided_slice %21 {offsets = [40, 0], sizes = [8, 52], strides = [1, 1]} : vector<112x52xf32> to vector<8x52xf32>
    %30 = arith.maximumf %28, %29 : vector<8x52xf32>
    %31 = vector.extract_strided_slice %21 {offsets = [48, 0], sizes = [8, 52], strides = [1, 1]} : vector<112x52xf32> to vector<8x52xf32>
    %32 = vector.extract_strided_slice %21 {offsets = [56, 0], sizes = [8, 52], strides = [1, 1]} : vector<112x52xf32> to vector<8x52xf32>
    %33 = arith.maximumf %31, %32 : vector<8x52xf32>
    %34 = vector.extract_strided_slice %21 {offsets = [64, 0], sizes = [8, 52], strides = [1, 1]} : vector<112x52xf32> to vector<8x52xf32>
    %35 = vector.extract_strided_slice %21 {offsets = [72, 0], sizes = [8, 52], strides = [1, 1]} : vector<112x52xf32> to vector<8x52xf32>
    %36 = arith.maximumf %34, %35 : vector<8x52xf32>
    %37 = vector.extract_strided_slice %21 {offsets = [80, 0], sizes = [8, 52], strides = [1, 1]} : vector<112x52xf32> to vector<8x52xf32>
    %38 = vector.extract_strided_slice %21 {offsets = [88, 0], sizes = [8, 52], strides = [1, 1]} : vector<112x52xf32> to vector<8x52xf32>
    %39 = arith.maximumf %37, %38 : vector<8x52xf32>
    %40 = vector.extract_strided_slice %21 {offsets = [96, 0], sizes = [8, 52], strides = [1, 1]} : vector<112x52xf32> to vector<8x52xf32>
    %41 = vector.extract_strided_slice %21 {offsets = [104, 0], sizes = [8, 52], strides = [1, 1]} : vector<112x52xf32> to vector<8x52xf32>
    %42 = arith.maximumf %40, %41 : vector<8x52xf32>
    %43 = tpu.concatenate %24, %27, %30, %33, %36, %39, %42 in 0 : vector<8x52xf32>, vector<8x52xf32>, vector<8x52xf32>, vector<8x52xf32>, vector<8x52xf32>, vector<8x52xf32>, vector<8x52xf32> -> vector<56x52xf32>
    %cst_13 = arith.constant 0.000000e+00 : f32
    %44 = vector.broadcast %cst_13 : f32 to vector<56x52xf32>
    %45 = arith.maximumf %43, %44 : vector<56x52xf32>
    %46 = arith.truncf %45 : vector<56x52xf32> to vector<56x52xbf16>
    %47 = vector.extract_strided_slice %46 {offsets = [0, 0], sizes = [40, 52], strides = [1, 1]} : vector<56x52xbf16> to vector<40x52xbf16>
    %c0_14 = arith.constant 0 : index
    %c0_15 = arith.constant 0 : index
    %c0_16 = arith.constant 0 : index
    %48 = vector.load %arg4[%c0_14, %c0_15, %c0_16] : memref<3x52x20xbf16, #tpu.memory_space<vmem>>, vector<1x52x20xbf16>
    %49 = vector.shape_cast %48 : vector<1x52x20xbf16> to vector<52x20xbf16>
    %cst_17 = arith.constant dense<0.000000e+00> : vector<40x20xf32>
    %50 = tpu.matmul %47, %49, %cst_17 {dimension_numbers = #tpu.dot_dimension_numbers<[1], [0], [0], [1], [0, 0, 1, 1], [], []>} : vector<40x52xbf16>, vector<52x20xbf16>, vector<40x20xf32> -> vector<40x20xf32>
    %51 = vector.extract_strided_slice %46 {offsets = [8, 0], sizes = [40, 52], strides = [1, 1]} : vector<56x52xbf16> to vector<40x52xbf16>
    %c1_18 = arith.constant 1 : index
    %c0_19 = arith.constant 0 : index
    %c0_20 = arith.constant 0 : index
    %52 = vector.load %arg4[%c1_18, %c0_19, %c0_20] : memref<3x52x20xbf16, #tpu.memory_space<vmem>>, vector<1x52x20xbf16>
    %53 = vector.shape_cast %52 : vector<1x52x20xbf16> to vector<52x20xbf16>
    %cst_21 = arith.constant dense<0.000000e+00> : vector<40x20xf32>
    %54 = tpu.matmul %51, %53, %cst_21 {dimension_numbers = #tpu.dot_dimension_numbers<[1], [0], [0], [1], [0, 0, 1, 1], [], []>} : vector<40x52xbf16>, vector<52x20xbf16>, vector<40x20xf32> -> vector<40x20xf32>
    %55 = arith.addf %50, %54 : vector<40x20xf32>
    %56 = vector.extract_strided_slice %46 {offsets = [16, 0], sizes = [40, 52], strides = [1, 1]} : vector<56x52xbf16> to vector<40x52xbf16>
    %c2_22 = arith.constant 2 : index
    %c0_23 = arith.constant 0 : index
    %c0_24 = arith.constant 0 : index
    %57 = vector.load %arg4[%c2_22, %c0_23, %c0_24] : memref<3x52x20xbf16, #tpu.memory_space<vmem>>, vector<1x52x20xbf16>
    %58 = vector.shape_cast %57 : vector<1x52x20xbf16> to vector<52x20xbf16>
    %cst_25 = arith.constant dense<0.000000e+00> : vector<40x20xf32>
    %59 = tpu.matmul %56, %58, %cst_25 {dimension_numbers = #tpu.dot_dimension_numbers<[1], [0], [0], [1], [0, 0, 1, 1], [], []>} : vector<40x52xbf16>, vector<52x20xbf16>, vector<40x20xf32> -> vector<40x20xf32>
    %60 = arith.addf %55, %59 : vector<40x20xf32>
    %c0_26 = arith.constant 0 : index
    %c0_27 = arith.constant 0 : index
    %61 = vector.load %arg5[%c0_26, %c0_27] : memref<1x20xf32, #tpu.memory_space<vmem>>, vector<1x20xf32>
    %62 = vector.broadcast %61 : vector<1x20xf32> to vector<40x20xf32>
    %63 = arith.addf %60, %62 : vector<40x20xf32>
    %64 = vector.extract_strided_slice %63 {offsets = [0, 0], sizes = [40, 16], strides = [1, 1]} : vector<40x20xf32> to vector<40x16xf32>
    %65 = vector.extract_strided_slice %63 {offsets = [0, 4], sizes = [40, 16], strides = [1, 1]} : vector<40x20xf32> to vector<40x16xf32>
    %66 = arith.maximumf %64, %65 : vector<40x16xf32>
    %67 = vector.extract_strided_slice %66 {offsets = [0, 0], sizes = [8, 16], strides = [1, 1]} : vector<40x16xf32> to vector<8x16xf32>
    %68 = vector.extract_strided_slice %66 {offsets = [8, 0], sizes = [8, 16], strides = [1, 1]} : vector<40x16xf32> to vector<8x16xf32>
    %69 = arith.maximumf %67, %68 : vector<8x16xf32>
    %70 = vector.extract_strided_slice %66 {offsets = [16, 0], sizes = [8, 16], strides = [1, 1]} : vector<40x16xf32> to vector<8x16xf32>
    %71 = vector.extract_strided_slice %66 {offsets = [24, 0], sizes = [8, 16], strides = [1, 1]} : vector<40x16xf32> to vector<8x16xf32>
    %72 = arith.maximumf %70, %71 : vector<8x16xf32>
    %73 = tpu.concatenate %69, %72 in 0 : vector<8x16xf32>, vector<8x16xf32> -> vector<16x16xf32>
    %cst_28 = arith.constant 0.000000e+00 : f32
    %74 = vector.broadcast %cst_28 : f32 to vector<16x16xf32>
    %75 = arith.maximumf %73, %74 : vector<16x16xf32>
    %76 = arith.truncf %75 : vector<16x16xf32> to vector<16x16xbf16>
    %77 = vector.extract_strided_slice %76 {offsets = [0, 0], sizes = [8, 16], strides = [1, 1]} : vector<16x16xbf16> to vector<8x16xbf16>
    %78 = vector.extract_strided_slice %76 {offsets = [8, 0], sizes = [8, 16], strides = [1, 1]} : vector<16x16xbf16> to vector<8x16xbf16>
    %79 = tpu.concatenate %77, %78 in 1 : vector<8x16xbf16>, vector<8x16xbf16> -> vector<8x32xbf16>
    %c0_29 = arith.constant 0 : index
    %c0_30 = arith.constant 0 : index
    %80 = vector.load %arg6[%c0_29, %c0_30] : memref<32x10xbf16, #tpu.memory_space<vmem>>, vector<32x10xbf16>
    %cst_31 = arith.constant dense<0.000000e+00> : vector<8x10xf32>
    %81 = tpu.matmul %79, %80, %cst_31 {dimension_numbers = #tpu.dot_dimension_numbers<[1], [0], [0], [1], [0, 0, 1, 1], [], []>} : vector<8x32xbf16>, vector<32x10xbf16>, vector<8x10xf32> -> vector<8x10xf32>
    %c0_32 = arith.constant 0 : index
    %c0_33 = arith.constant 0 : index
    %82 = vector.load %arg7[%c0_32, %c0_33] : memref<1x10xf32, #tpu.memory_space<vmem>>, vector<1x10xf32>
    %83 = vector.broadcast %82 : vector<1x10xf32> to vector<8x10xf32>
    %84 = arith.addf %81, %83 : vector<8x10xf32>
    %c0_34 = arith.constant 0 : index
    %c0_35 = arith.constant 0 : index
    %85 = vector.load %arg8[%c0_34, %c0_35] : memref<8x10xf32, #tpu.memory_space<vmem>>, vector<8x10xf32>
    tpu.vector_store %arg8[%c0_34, %c0_35], %84 {strides = array<i32>} : memref<8x10xf32, #tpu.memory_space<vmem>>, vector<8x10xf32>,
    return
  }
  func.func @transform_0(%arg0: i32) -> (i32, i32, i32) {
    %c0_i32 = arith.constant 0 : i32
    %c0_i32_0 = arith.constant 0 : i32
    %c0_i32_1 = arith.constant 0 : i32
    return %arg0, %c0_i32, %c0_i32_0 : i32, i32, i32
  }
  func.func @transform_1(%arg0: i32) -> (i32, i32, i32) {
    %c0_i32 = arith.constant 0 : i32
    %c0_i32_0 = arith.constant 0 : i32
    %c0_i32_1 = arith.constant 0 : i32
    %c0_i32_2 = arith.constant 0 : i32
    return %c0_i32, %c0_i32_0, %c0_i32_1 : i32, i32, i32
  }
  func.func @transform_2(%arg0: i32) -> (i32, i32) {
    %c0_i32 = arith.constant 0 : i32
    %c0_i32_0 = arith.constant 0 : i32
    %c0_i32_1 = arith.constant 0 : i32
    return %c0_i32, %c0_i32_0 : i32, i32
  }
  func.func @transform_3(%arg0: i32) -> (i32, i32, i32) {
    %c0_i32 = arith.constant 0 : i32
    %c0_i32_0 = arith.constant 0 : i32
    %c0_i32_1 = arith.constant 0 : i32
    %c0_i32_2 = arith.constant 0 : i32
    return %c0_i32, %c0_i32_0, %c0_i32_1 : i32, i32, i32
  }
  func.func @transform_4(%arg0: i32) -> (i32, i32) {
    %c0_i32 = arith.constant 0 : i32
    %c0_i32_0 = arith.constant 0 : i32
    %c0_i32_1 = arith.constant 0 : i32
    return %c0_i32, %c0_i32_0 : i32, i32
  }
  func.func @transform_5(%arg0: i32) -> (i32, i32) {
    %c0_i32 = arith.constant 0 : i32
    %c0_i32_0 = arith.constant 0 : i32
    %c0_i32_1 = arith.constant 0 : i32
    return %c0_i32, %c0_i32_0 : i32, i32
  }
  func.func @transform_6(%arg0: i32) -> (i32, i32) {
    %c0_i32 = arith.constant 0 : i32
    %c0_i32_0 = arith.constant 0 : i32
    %c0_i32_1 = arith.constant 0 : i32
    return %c0_i32, %c0_i32_0 : i32, i32
  }
  func.func @transform_7(%arg0: i32) -> (i32, i32) {
    %c0_i32 = arith.constant 0 : i32
    %c0_i32_0 = arith.constant 0 : i32
    return %arg0, %c0_i32 : i32, i32
  }
}

</mosaic_0001>

<bundles_post_ra>
// kernel: cnn_forward.1
= control target key start
LH: loop header
LB: loop body
LE: loop exit
PB: predicated region body
PF: predicated region fallthrough
CT: control target
= control target key end

     0   :  { %12 = vsyncpa [#allocation3], 0  ;;  %s1847_s0 = inlined_call_operand.vmem [shape: bf16[2,128,48], index: 0, kind: input, shape index: {}]   ;;  %s1848_s1 = inlined_call_operand.vmem [shape: bf16[3,48,56], index: 1, kind: input, shape index: {}]   ;;  %s1849_s2 = inlined_call_operand.vmem [shape: f32[1,56], index: 2, kind: input, shape index: {}]   ;;  %s1850_s3 = inlined_call_operand.vmem [shape: bf16[3,52,20], index: 3, kind: input, shape index: {}]   ;;  %s1851_s4 = inlined_call_operand.vmem [shape: f32[1,20], index: 4, kind: input, shape index: {}]   ;;  %s1852_s5 = inlined_call_operand.vmem [shape: bf16[32,10], index: 5, kind: input, shape index: {}]   ;;  %s1853_s6 = inlined_call_operand.vmem [shape: f32[1,10], index: 6, kind: input, shape index: {}]   ;;  %s1854_s7 = inlined_call_operand.hbm [shape: f32[16,10], index: 7, kind: output, shape index: {}]  }
   0x1   :  { %14 = vsyncpa [#allocation3 + $0x1], 0  ;;  %s1545_s24 = smov 0   ;;  %s1547_s25 = smov 0  }
   0x2   :  { %s1549_s26 = smov 0   ;;  %s1551_s27 = smov 0  }
   0x3 LB: > { %s1566_s28 = sadd.s32 4294967295, %s1501_s27   ;;  %s1085_s29 = sadd.s32 4294967294, %s1501_s27   ;;  %s1501_s27 = sphi %s1551_s27, %s1860_s27   ;;  %s1497_s26 = sphi %s1549_s26, %s1859_s26   ;;  %s1493_s25 = sphi %s1547_s25, %s1858_s25   ;;  %s1489_s24 = sphi %s1545_s24, %s1857_s24  }
   0x4   : > { %s1570_s30 = sadd.s32 1, %s1501_s27   ;;  %s179_s8 = sadd.s32 1, %s1497_s26 }
   0x5   : > { %s176_s9 = ssub.s32 %s1501_s27, %s1570_s30  ;;  %p189_p0 = scmp.ne.s32.totalorder %s1497_s26, %s1493_s25 }
   0x6   : > { %p177_p1 = scmp.eq.s32.totalorder %s176_s9, 0  ;;  %p190_p2 = scmp.eq.s32.totalorder %s1566_s28, 1 }
   0x7   : > { %p195_p3 = scmp.ne.s32.totalorder %s1493_s25, %s1489_s24  ;;  %p196_p4 = scmp.eq.s32.totalorder %s1085_s29, 1 }
   0x8   : > { %s1581_s10 = scalar_select %p177_p1, %s1497_s26, %s179_s8  }
   0x9   : > { %p1583_p5 = por %p190_p2, %p189_p0  ;;  %p1587_p6 = por %p196_p4, %p195_p3 }
   0xa   : > { %p1088_p7 = scmp.ge.s32.totalorder %s1501_s27, 1  ;;  %p240_p8 = scmp.lt.s32.totalorder %s1501_s27, 3 }
   0xc   : > { %p241_p9 = pnand %p1088_p7, %p240_p8 }
   0xd   : > { %p272_p10 = scmp.lt.s32.totalorder (!%p241_p9), %s1566_s28, 1  ;;  %s1503_s29 = smov (!%p241_p9), 124  }
   0xe   : > { %244 = sbr.rel (%p241_p9) target bundleno = 992 (0x3e0), region = 48  ;;  %s269_s15 = sand.u32 (!%p241_p9), 1, %s1493_s25  }
   0xf   : > { %s1230_s16 = sshll.u32 (!%p241_p9), %s1566_s28, 3  ;;  %s1089_s17 = sshll.u32 (!%p241_p9), %s269_s15, 3 }
  0x10   : > { %s1021_s20 = scalar_lea.hbm (!%p241_p9), %s1854_s7, %s1230_s16  ;;  %s271_s23 = scalar_lea.vmem (!%p241_p9), [#allocation2], %s1089_s17 }
  0x11   : > { %s1459_s17 = scalar_lea.hbm (!%p241_p9), %s1854_s7, 16 }
  0x13   : > { %v1239_v0 = vld [vmem:[%s1848_s1 + $0x28] sm:$0xff]  ;;  %v1236_v1 = vld [vmem:[%s1848_s1 + $0x10] sm:$0xff]  ;;  %v1242_v2 = vld [vmem:[%s1848_s1 + $0x40] sm:$0xff]  ;;  %s273_s8 = scalar_select %p272_p10, %s1566_s28, 1  ;;  %vm360_vm0 = vcmask 392192   ;;  %vm775_vm1 = vcmask 1041408  }
  0x14   : > { %387 = vmatpush.bf16.msra.mxu0 %v1239_v0  ;;  %479 = vmatpush.bf16.msra.mxu1 %v1236_v1  ;;  %v1238_v3 = vld [vmem:[%s1848_s1 + $0x20] sm:$0xff]  ;;  %v1235_v4 = vld [vmem:[%s1848_s1 + $0x8] sm:$0xff]  ;;  %v1241_v5 = vld [vmem:[%s1848_s1 + $0x38] sm:$0xff]  ;;  %vm765_vm2 = vcmask 424960   ;;  %vm968_vm3 = vcmask 130048   ;;  %vm992_vm4 = vcmask 261120  }
  0x15   : > { %554 = vmatpush.bf16.msra.mxu2 %v1242_v2  ;;  %s1233_s9 = sshll.u32 %s273_s8, 6  ;;  %v1237_v6 = vld [vmem:[%s1848_s1 + $0x18] sm:$0xff]  ;;  %v1234_v7 = vld [vmem:[%s1848_s1] sm:$0xff]  ;;  %v1240_v8 = vld [vmem:[%s1848_s1 + $0x30] sm:$0xff]  ;;  %s1023_s8 = sshll.u32 %s271_s23, 4  ;;  %vm1008_vm5 = vcmask 80896   ;;  %s1024_s8 = int_to_ptr.vmem [resolvable:$true] %s1023_s8 }
  0x16   : > { %s1622_s19 = scalar_lea.vmem %s1847_s0, %s1233_s9  ;;  %v1666_v41 = vld [vmem:[%s1849_s2] ss:$0 sm:$0xff]  ;;  %s1025_s9 = sshll.u32 %s1021_s20, 4  ;;  %s1026_s9 = int_to_ptr.hbm [resolvable:$true] %s1025_s9 }
  0x17   : > { %v1338_v9 = vld [vmem:[%s1622_s19 + $0x4] sm:$0xff]   ;;  %v1340_v12 = vld [vmem:[%s1622_s19 + $0xc] sm:$0xff]   ;;  %v1342_v14 = vld [vmem:[%s1622_s19 + $0x14] sm:$0xff]   ;;  %s1011_s28 = scalar_lea.sflag [#allocation3], %s269_s15  ;;  %s1453_s13 = sshra.s32 %s1026_s9, 4  ;;  %s1454_s13 = int_to_ptr.hbm [resolvable:$true] %s1453_s13 }
  0x18   : > { %388 = vmatpush.bf16.msra.mxu0 %v1238_v3  ;;  %480 = vmatpush.bf16.msra.mxu1 %v1235_v4  ;;  %v1255_v10 = vld [vmem:[%s1622_s19] sm:$0xff]   ;;  %v1286_v11 = vld [vmem:[%s1622_s19 + $0x8] sm:$0xff]   ;;  %v1287_v13 = vld [vmem:[%s1622_s19 + $0x10] sm:$0xff]   ;;  %s1455_s14 = scalar_lea.hbm %s1454_s13, 8  ;;  %p1460_p0 = scmp.lt.s32.totalorder %s1454_s13, %s1854_s7 }
  0x19   : > { %555 = vmatpush.bf16.msra.mxu2 %v1241_v5  ;;  %v1288_v15 = vld [vmem:[%s1622_s19 + $0x18] sm:$0xff]   ;;  %v1289_v17 = vld [vmem:[%s1622_s19 + $0x20] sm:$0xff]   ;;  %v1290_v19 = vld [vmem:[%s1622_s19 + $0x28] sm:$0xff]   ;;  %p1456_p11 = scmp.ne.s32.totalorder %s1454_s13, %s1455_s14  ;;  %p1461_p1 = scmp.lt.s32.totalorder %s1459_s17, %s1455_s14 }
  0x1a   : > { %v1344_v16 = vld [vmem:[%s1622_s19 + $0x1c] sm:$0xff]   ;;  %v1346_v18 = vld [vmem:[%s1622_s19 + $0x24] sm:$0xff]   ;;  %v1348_v20 = vld [vmem:[%s1622_s19 + $0x2c] sm:$0xff]  }
  0x1b   : > { %v1291_v21 = vld [vmem:[%s1622_s19 + $0x30] sm:$0xff]   ;;  %p1457_p12 = pnand %p1456_p11, %p1583_p5  ;;  %p1462_p2 = por %p1461_p1, %p1460_p0 }
  0x1c   : > { %389 = vmatpush.bf16.msra.mxu0 %v1237_v6  ;;  %481 = vmatpush.bf16.msra.mxu1 %v1234_v7 }
  0x1d   : > { %556 = vmatpush.bf16.msra.mxu2 %v1240_v8  ;;  %p1458_p13 = pneg %p1457_p12 }
  0x1f   : > { %1110 = vmatmul.msk.bf16.vlgmr.msra.gmra.mxu0 %vm360_vm0, %v1338_v9  ;;  %1129 = vmatmul.msk.bf16.vlgmr.msra.gmra.mxu1 %vm360_vm0, %v1255_v10  ;;  %p1463_p3 = pnand %p1462_p2, %p1458_p13 }
  0x20   : > { %1154 = vmatmul.msk.bf16.vlgmr.msra.gmra.mxu2 %vm360_vm0, %v1286_v11 }
  0x2f   : > { %1111 = vmatmul.msk.bf16.gmra.mxu0 %vm360_vm0, %v1340_v12  ;;  %1130 = vmatmul.msk.bf16.gmra.mxu1 %vm360_vm0, %v1286_v11 }
  0x30   : > { %1155 = vmatmul.msk.bf16.gmra.mxu2 %vm360_vm0, %v1287_v13 }
  0x3f   : > { %1112 = vmatmul.msk.bf16.gmra.mxu0 %vm360_vm0, %v1342_v14  ;;  %1131 = vmatmul.msk.bf16.gmra.mxu1 %vm360_vm0, %v1287_v13 }
  0x40   : > { %1156 = vmatmul.msk.bf16.gmra.mxu2 %vm360_vm0, %v1288_v15 }
  0x4f   : > { %1113 = vmatmul.msk.bf16.gmra.mxu0 %vm360_vm0, %v1344_v16  ;;  %1132 = vmatmul.msk.bf16.gmra.mxu1 %vm360_vm0, %v1288_v15 }
  0x50   : > { %1157 = vmatmul.msk.bf16.gmra.mxu2 %vm360_vm0, %v1289_v17 }
  0x5f   : > { %1114 = vmatmul.msk.bf16.gmra.mxu0 %vm360_vm0, %v1346_v18  ;;  %1133 = vmatmul.msk.bf16.gmra.mxu1 %vm360_vm0, %v1289_v17 }
  0x60   : > { %1158 = vmatmul.msk.bf16.gmra.mxu2 %vm360_vm0, %v1290_v19 }
  0x6f   : > { %1115 = vmatmul.msk.bf16.gmra.mxu0 %vm360_vm0, %v1348_v20  ;;  %1134 = vmatmul.msk.bf16.gmra.mxu1 %vm360_vm0, %v1290_v19 }
  0x70   : > { %1159 = vmatmul.msk.bf16.gmra.mxu2 %vm360_vm0, %v1291_v21 }
  0x7f   : > { %1135 = vmatmul.msk.bf16.gmra.mxu1 %vm360_vm0, %v1291_v21 }
  0x9c   : > { %v391_v22 = vpop.f32.mrf.mxu0  ;;  %v483_v23 = vpop.f32.mrf.mxu1 }
  0x9d   : > { %v484_v24 = vadd.f32 %v483_v23, %v391_v22 }
  0xa3   : > { %v558_v25 = vpop.f32.mrf.mxu2 }
  0xa4   : > { %v1659_v26 = vadd.f32 %v558_v25, %v484_v24  ;;  %v393_v27 = vpop.f32.mrf.mxu0  ;;  %v485_v28 = vpop.f32.mrf.mxu1 }
  0xa5   : > { %v486_v29 = vadd.f32 %v485_v28, %v393_v27 }
  0xab   : > { %v560_v30 = vpop.f32.mrf.mxu2 }
  0xac   : > { %v1661_v31 = vadd.f32 %v560_v30, %v486_v29  ;;  %v396_v32 = vpop.f32.mrf.mxu0  ;;  %v488_v33 = vpop.f32.mrf.mxu1 }
  0xad   : > { %v489_v37 = vadd.f32 %v488_v33, %v396_v32 }
  0xb3   : > { %v563_v34 = vpop.f32.mrf.mxu2 }
  0xb4   : > { %v398_v35 = vpop.f32.mrf.mxu0  ;;  %v490_v36 = vpop.f32.mrf.mxu1  ;;  %v595_v38 = vadd.f32 %v563_v34, %v489_v37  ;;  %v1719_v37 = vadd.f32 %v1666_v41, %v1659_v26 }
  0xb5   : > { %v491_v39 = vadd.f32 %v490_v36, %v398_v35  ;;  %v1715_v36 = vadd.f32 %v1666_v41, %v1661_v31  ;;  %v1167_v31 = vld [vmem:[%s1850_s3 + $0x34] sm:$0x3] }
  0xb6   : > { %v1669_v45 = vadd.f32 %v1666_v41, %v595_v38 }
  0xb7   : > { %v1396_v38 = vpack.i.bf16 %v1715_v36, %v1719_v37 }
  0xbb   : > { %v565_v40 = vpop.f32.mrf.mxu2 }
  0xbc   : > { %v596_v42 = vadd.f32 %v565_v40, %v491_v39  ;;  %v401_v43 = vpop.f32.mrf.mxu0  ;;  %v493_v44 = vpop.f32.mrf.mxu1  ;;  %v1292_v39 = vld [vmem:[%s1622_s19 + $0x38] sm:$0xff]  }
  0xbd   : > { %v494_v51 = vadd.f32 %v493_v44, %v401_v43  ;;  %1160 = vmatmul.msk.bf16.gmra.mxu2 %vm360_vm0, %v1292_v39  ;;  %v1349_v40 = vld [vmem:[%s1622_s19 + $0x34] sm:$0xff]   ;;  %v1248_v44 = vld [vmem:[%s1850_s3 + $0x2c] sm:$0xff] }
  0xbe   : > { %v1672_v46 = vadd.f32 %v1666_v41, %v596_v42  ;;  %1116 = vmatmul.msk.bf16.gmra.mxu0 %vm360_vm0, %v1349_v40  ;;  %v757_v42 = vunpack.c.l.b16 %v1167_v31 }
  0xc0   : > { %v1401_v47 = vpack.i.bf16 %v1672_v46, %v1669_v45  ;;  %v761_v43 = vpack.c.b16 %v757_v42, %v757_v42 }
  0xc2   : > { %1402 = vrot.lane.b32.xlu1 %v1401_v47, %s1503_s29  ;;  %v777_v26 = vsel %vm775_vm1, %v761_v43, 0  ;;  %v1247_v47 = vld [vmem:[%s1850_s3 + $0x24] sm:$0xff] }
  0xc3   : > { %v568_v48 = vpop.f32.mrf.mxu2  ;;  %783 = vmatpush.bf16.msrb.mxu1 %v777_v26  ;;  %1328 = vmatpush.bf16.msrb.mxu2 %v777_v26 }
  0xc4   : > { %v403_v49 = vpop.f32.mrf.mxu0  ;;  %v495_v50 = vpop.f32.mrf.mxu1  ;;  %v597_v52 = vadd.f32 %v568_v48, %v494_v51  ;;  %1329 = vmatpush.bf16.msra.mxu3 %v777_v26  ;;  %v1246_v48 = vld [vmem:[%s1850_s3 + $0x1c] sm:$0xff] }
  0xc5   : > { %v496_v53 = vadd.f32 %v495_v50, %v403_v49 }
  0xc6   : > { %v1678_v58 = vadd.f32 %v1666_v41, %v597_v52 }
  0xc7   : > { %784 = vmatpush.bf16.msrb.mxu1 %v1248_v44  ;;  %1330 = vmatpush.bf16.msrb.mxu2 %v1248_v44 }
  0xc8   : > { %1331 = vmatpush.bf16.msra.mxu3 %v1248_v44 }
  0xcb   : > { %v570_v54 = vpop.f32.mrf.mxu2  ;;  %785 = vmatpush.bf16.msrb.mxu1 %v1247_v47  ;;  %1332 = vmatpush.bf16.msrb.mxu2 %v1247_v47 }
  0xcc   : > { %v598_v55 = vadd.f32 %v570_v54, %v496_v53  ;;  %v406_v56 = vpop.f32.mrf.mxu0  ;;  %v498_v57 = vpop.f32.mrf.mxu1  ;;  %1333 = vmatpush.bf16.msra.mxu3 %v1247_v47 }
  0xcd   : > { %v499_v0 = vadd.f32 %v498_v57, %v406_v56 }
  0xce   : > { %v1681_v59 = vadd.f32 %v1666_v41, %v598_v55 }
  0xcf   : > { %786 = vmatpush.bf16.msrb.mxu1 %v1246_v48  ;;  %1334 = vmatpush.bf16.msrb.mxu2 %v1246_v48 }
  0xd0   : > { %v1406_v60 = vpack.i.bf16 %v1681_v59, %v1678_v58  ;;  %1335 = vmatpush.bf16.msra.mxu3 %v1246_v48 }
  0xd2   : > { %1407 = vrot.lane.b32.xlu1 %v1406_v60, %s1503_s29 }
  0xd3   : > { %v573_v61 = vpop.f32.mrf.mxu2 }
  0xd4   : > { %v408_v62 = vpop.f32.mrf.mxu0  ;;  %v500_v63 = vpop.f32.mrf.mxu1  ;;  %v599_v1 = vadd.f32 %v573_v61, %v499_v0 }
  0xd5   : > { %v501_v2 = vadd.f32 %v500_v63, %v408_v62 }
  0xd6   : > { %v1687_v7 = vadd.f32 %v1666_v41, %v599_v1 }
  0xdb   : > { %v575_v3 = vpop.f32.mrf.mxu2 }
  0xdc   : > { %v600_v4 = vadd.f32 %v575_v3, %v501_v2  ;;  %v411_v5 = vpop.f32.mrf.mxu0  ;;  %v503_v6 = vpop.f32.mrf.mxu1 }
  0xdd   : > { %v504_v13 = vadd.f32 %v503_v6, %v411_v5 }
  0xde   : > { %v1690_v8 = vadd.f32 %v1666_v41, %v600_v4 }
  0xe0   : > { %v1411_v9 = vpack.i.bf16 %v1690_v8, %v1687_v7 }
  0xe2   : > { %1412 = vrot.lane.b32.xlu2 %v1411_v9, %s1503_s29 }
  0xe3   : > { %v578_v10 = vpop.f32.mrf.mxu2 }
  0xe4   : > { %v413_v11 = vpop.f32.mrf.mxu0  ;;  %v505_v12 = vpop.f32.mrf.mxu1  ;;  %v601_v14 = vadd.f32 %v578_v10, %v504_v13 }
  0xe5   : > { %v506_v15 = vadd.f32 %v505_v12, %v413_v11 }
  0xe6   : > { %v1696_v20 = vadd.f32 %v1666_v41, %v601_v14 }
  0xeb   : > { %v580_v16 = vpop.f32.mrf.mxu2 }
  0xec   : > { %v602_v17 = vadd.f32 %v580_v16, %v506_v15  ;;  %v416_v18 = vpop.f32.mrf.mxu0  ;;  %v508_v19 = vpop.f32.mrf.mxu1 }
  0xed   : > { %v509_v24 = vadd.f32 %v508_v19, %v416_v18 }
  0xee   : > { %v1699_v21 = vadd.f32 %v1666_v41, %v602_v17 }
  0xf0   : > { %v1416_v22 = vpack.i.bf16 %v1699_v21, %v1696_v20 }
  0xf2   : > { %1417 = vrot.lane.b32.xlu2 %v1416_v22, %s1503_s29 }
  0xf3   : > { %v583_v23 = vpop.f32.mrf.mxu2 }
  0xf4   : > { %v418_v25 = vpop.f32.mrf.mxu0  ;;  %v510_v27 = vpop.f32.mrf.mxu1  ;;  %v603_v28 = vadd.f32 %v583_v23, %v509_v24 }
  0xf5   : > { %v511_v29 = vadd.f32 %v510_v27, %v418_v25  ;;  %v1245_v27 = vld [vmem:[%s1850_s3 + $0x10] sm:$0xff] }
  0xf6   : > { %v1705_v33 = vadd.f32 %v1666_v41, %v603_v28  ;;  %v1244_v28 = vld [vmem:[%s1850_s3 + $0x8] sm:$0xff] }
  0xfb   : > { %v585_v30 = vpop.f32.mrf.mxu2 }
  0xfc   : > { %v604_v32 = vadd.f32 %v585_v30, %v511_v29  ;;  %v1243_v29 = vld [vmem:[%s1850_s3] sm:$0xff] }
  0xfe   : > { %v1708_v34 = vadd.f32 %v1666_v41, %v604_v32 }
 0x100   : > { %v1391_v35 = vpack.i.bf16 %v1708_v34, %v1705_v33 }
 0x102   : > { %1392 = vrot.lane.b32.xlu0 %v1391_v35, %s1503_s29 }
 0x10a   : > { %1397 = vrot.lane.b32.xlu0 %v1396_v38, %s1503_s29  ;;  %v1204_v38 = vld [vmem:[%s1850_s3 + $0x50] sm:$0x3] }
 0x10b   : > { %v886_v42 = vunpack.c.l.b16 %v1204_v38 }
 0x134   : > { %v1403_v49 = vpop.permute.xlu1 %1402 }
 0x135   : > { %v1405_v50 = vunpack.i.h.bf16 %v1403_v49  ;;  %v1404_v51 = vunpack.i.l.bf16 %v1403_v49  ;;  %v890_v49 = vpack.c.b16 %v886_v42, %v886_v42 }
 0x137   : > { %v684_v55 = vmax.f32 %v1672_v46, %v1405_v50  ;;  %v683_v56 = vmax.f32 %v1669_v45, %v1404_v51 }
 0x139   : > { %v696_v61 = vmax.f32 %v683_v56, %v684_v55  ;;  %v901_v55 = vsel %vm775_vm1, %v890_v49, 0 }
 0x13b   : > { %v703_v2 = vmax.f32 %v696_v61, 0.0  ;;  %v1249_v61 = vld [vmem:[%s1850_s3 + $0x38] sm:$0xff] }
 0x13c   : > { %v1413_v52 = vpop.permute.xlu2 %1412 }
 0x13d   : > { %v1415_v53 = vunpack.i.h.bf16 %v1413_v52  ;;  %v1414_v54 = vunpack.i.l.bf16 %v1413_v52  ;;  %v710_v9 = vpack.c.bf16 %v703_v2, %v703_v2 }
 0x13f   : > { %v688_v57 = vmax.f32 %v1690_v8, %v1415_v53  ;;  %v687_v60 = vmax.f32 %v1687_v7, %v1414_v54  ;;  %v736_v7 = vunpack.c.l.b16 %v710_v9 }
 0x141   : > { %v698_v62 = vmax.f32 %v687_v60, %v688_v57 }
 0x143   : > { %v705_v3 = vmax.f32 %v698_v62, 0.0  ;;  %v513_v62 = vpop.f32.mrf.mxu1 }
 0x144   : > { %v1408_v63 = vpop.permute.xlu1 %1407 }
 0x145   : > { %v1410_v0 = vunpack.i.h.bf16 %v1408_v63  ;;  %v1409_v1 = vunpack.i.l.bf16 %v1408_v63  ;;  %v712_v46 = vpack.c.bf16 %v705_v3, %v705_v3  ;;  %v421_v63 = vpop.f32.mrf.mxu0 }
 0x147   : > { %v686_v4 = vmax.f32 %v1681_v59, %v1410_v0  ;;  %v685_v5 = vmax.f32 %v1678_v58, %v1409_v1  ;;  %v738_v13 = vunpack.c.l.b16 %v712_v46  ;;  %v588_v0 = vpop.f32.mrf.mxu2  ;;  %v514_v1 = vadd.f32 %v513_v62, %v421_v63 }
 0x149   : > { %v697_v6 = vmax.f32 %v685_v5, %v686_v4  ;;  %v605_v3 = vadd.f32 %v588_v0, %v514_v1 }
 0x14b   : > { %v704_v10 = vmax.f32 %v697_v6, 0.0  ;;  %v515_v2 = vpop.f32.mrf.mxu1  ;;  %v623_v9 = vadd.f32 %v1666_v41, %v605_v3 }
 0x14c   : > { %v1418_v45 = vpop.permute.xlu2 %1417 }
 0x14d   : > { %v711_v11 = vpack.c.bf16 %v704_v10, %v704_v10  ;;  %v1420_v8 = vunpack.i.h.bf16 %v1418_v45  ;;  %v1419_v12 = vunpack.i.l.bf16 %v1418_v45  ;;  %v423_v4 = vpop.f32.mrf.mxu0 }
 0x14e   : > { %v516_v5 = vadd.f32 %v515_v2, %v423_v4 }
 0x14f   : > { %v737_v14 = vunpack.c.l.b16 %v711_v11  ;;  %v690_v15 = vmax.f32 %v1699_v21, %v1420_v8  ;;  %v689_v16 = vmax.f32 %v1696_v20, %v1419_v12  ;;  %v722_v21 = vld [vmem:[%s1850_s3 + $0x18] sm:$0x3]  ;;  %v590_v6 = vpop.f32.mrf.mxu2 }
 0x150   : > { %v819_v20 = vunpack.c.l.b16 %v722_v21  ;;  %v606_v46 = vadd.f32 %v590_v6, %v516_v5 }
 0x151   : > { %v699_v17 = vmax.f32 %v689_v16, %v690_v15  ;;  %v741_v59 = vpack.c.b16 %v737_v14, %v736_v7  ;;  %v1749_v18 = vpack.c.b16 %v738_v13, %v737_v14 }
 0x152   : > { %v823_v24 = vpack.c.b16 %v819_v20, %v819_v20  ;;  %v624_v10 = vadd.f32 %v1666_v41, %v606_v46 }
 0x153   : > { %v706_v58 = vmax.f32 %v699_v17, 0.0  ;;  %1180 = vmatmul.msk.bf16.vlgmr.msrb.gmra.mxu1 %vm765_vm2, %v741_v59 }
 0x154   : > { %v837_v25 = vsel %vm775_vm1, %v823_v24, 0  ;;  %v1426_v45 = vpack.i.bf16 %v624_v10, %v623_v9 }
 0x155   : > { %v713_v19 = vpack.c.bf16 %v706_v58, %v706_v58  ;;  %843 = vmatpush.bf16.msrb.mxu3 %v837_v25 }
 0x156   : > { %1427 = vrot.lane.b32.xlu1 %v1426_v45, %s1503_s29 }
 0x157   : > { %v1752_v22 = vunpack.c.l.b16 %v713_v19 }
 0x159   : > { %v742_v23 = vpack.c.b16 %v1752_v22, %v738_v13  ;;  %844 = vmatpush.bf16.msrb.mxu3 %v1245_v27  ;;  %v805_v11 = vpack.c.b16 %v1752_v22, %v1752_v22 }
 0x15b   : > { %1181 = vmatmul.msk.bf16.vlgmr.msrb.gmra.mxu2 %vm765_vm2, %v742_v23 }
 0x15d   : > { %845 = vmatpush.bf16.msrb.mxu3 %v1244_v28 }
 0x161   : > { %846 = vmatpush.bf16.msrb.mxu3 %v1243_v29 }
 0x174   : > { %v1393_v30 = vpop.permute.xlu0 %1392 }
 0x175   : > { %v1395_v32 = vunpack.i.h.bf16 %v1393_v30  ;;  %v1394_v35 = vunpack.i.l.bf16 %v1393_v30 }
 0x177   : > { %v692_v39 = vmax.f32 %v1708_v34, %v1395_v32  ;;  %v691_v40 = vmax.f32 %v1705_v33, %v1394_v35  ;;  %v1251_v33 = vld [vmem:[%s1850_s3 + $0x48] sm:$0xff]  ;;  %v1437_v35 = vld [vmem:[%s1851_s4] ss:$0 sm:$0xff] }
 0x179   : > { %v700_v31 = vmax.f32 %v691_v40, %v692_v39 }
 0x17b   : > { %v707_v43 = vmax.f32 %v700_v31, 0.0 }
 0x17c   : > { %v1398_v26 = vpop.permute.xlu0 %1397 }
 0x17d   : > { %v1400_v44 = vunpack.i.h.bf16 %v1398_v26  ;;  %v1399_v47 = vunpack.i.l.bf16 %v1398_v26  ;;  %v714_v48 = vpack.c.bf16 %v707_v43, %v707_v43 }
 0x17f   : > { %v682_v50 = vmax.f32 %v1715_v36, %v1400_v44  ;;  %v681_v51 = vmax.f32 %v1719_v37, %v1399_v47  ;;  %v740_v52 = vunpack.c.l.b16 %v714_v48  ;;  %v1250_v36 = vld [vmem:[%s1850_s3 + $0x40] sm:$0xff] }
 0x181   : > { %v695_v53 = vmax.f32 %v681_v51, %v682_v50  ;;  %v743_v54 = vpack.c.b16 %v740_v52, %v740_v52  ;;  %v871_v34 = vpack.c.b16 %v740_v52, %v1752_v22 }
 0x183   : > { %1182 = vmatmul.msk.bf16.vlgmr.msra.gmra.mxu3 %vm765_vm2, %v743_v54  ;;  %v702_v56 = vmax.f32 %v695_v53, 0.0 }
 0x184   : > { %907 = vmatpush.bf16.msra.mxu3 %v901_v55 }
 0x185   : > { %v709_v37 = vpack.c.bf16 %v702_v56, %v702_v56  ;;  %v1252_v56 = vld [vmem:[%s1852_s5] sm:$0xff] }
 0x187   : > { %v802_v57 = vunpack.c.l.b16 %v709_v37 }
 0x188   : > { %908 = vmatpush.bf16.msra.mxu3 %v1251_v33  ;;  %v1253_v33 = vld [vmem:[%s1852_s5 + $0x8] sm:$0xff] }
 0x189   : > { %v803_v60 = vpack.c.b16 %v736_v7, %v802_v57  ;;  %1001 = vmatpush.bf16.msrb.mxu0 %v1253_v33 }
 0x18c   : > { %909 = vmatpush.bf16.msra.mxu3 %v1250_v36 }
 0x18d   : > { %1002 = vmatpush.bf16.msrb.mxu0 %v1252_v56 }
 0x190   : > { %910 = vmatpush.bf16.msra.mxu3 %v1249_v61 }
 0x193   : > { %1195 = vmatmul.msk.bf16.vlgmr.msrb.gmra.mxu3 %vm765_vm2, %v803_v60 }
 0x1a3   : > { %1196 = vmatmul.msk.bf16.gmra.mxu3 %vm765_vm2, %v1749_v18 }
 0x1b3   : > { %1197 = vmatmul.msk.bf16.gmra.mxu3 %vm765_vm2, %v805_v11 }
 0x1c3   : > { %1217 = vmatmul.msk.bf16.vlgmr.msra.gmra.mxu3 %vm765_vm2, %v1749_v18 }
 0x1c8   : > { %v1428_v14 = vpop.permute.xlu1 %1427 }
 0x1c9   : > { %v1430_v15 = vunpack.i.h.bf16 %v1428_v14  ;;  %v1429_v41 = vunpack.i.l.bf16 %v1428_v14 }
 0x1cb   : > { %v694_v16 = vmax.f32 %v624_v10, %v1430_v15  ;;  %v693_v17 = vmax.f32 %v623_v9, %v1429_v41 }
 0x1cd   : > { %v701_v59 = vmax.f32 %v693_v17, %v694_v16 }
 0x1cf   : > { %v708_v58 = vmax.f32 %v701_v59, 0.0 }
 0x1d0   : > { %v788_v25 = vpop.f32.mrf.mxu1 }
 0x1d1   : > { %v715_v22 = vpack.c.bf16 %v708_v58, %v708_v58 }
 0x1d3   : > { %1218 = vmatmul.msk.bf16.gmra.mxu3 %vm765_vm2, %v871_v34  ;;  %v870_v23 = vunpack.c.l.b16 %v715_v22 }
 0x1d5   : > { %v872_v21 = vpack.c.b16 %v870_v23, %v870_v23 }
 0x1d8   : > { %v790_v29 = vpop.f32.mrf.mxu1 }
 0x1de   : > { %v793_v42 = vpop.f32.mrf.mxu2 }
 0x1e3   : > { %1219 = vmatmul.msk.bf16.gmra.mxu3 %vm765_vm2, %v872_v21 }
 0x1e6   : > { %v795_v47 = vpop.f32.mrf.mxu2 }
 0x206   : > { %v798_v8 = vpop.f32.mrf.mxu3 }
 0x20e   : > { %v799_v12 = vpop.f32.mrf.mxu3 }
 0x20f   : > { %v1438_v12 = vld [vmem:[%s1853_s6] ss:$0 sm:$0xff] }
 0x216   : > { %v848_v7 = vpop.f32.mrf.mxu3 }
 0x217   : > { %v849_v28 = vadd.f32 %v848_v7, %v788_v25 }
 0x21e   : > { %v850_v13 = vpop.f32.mrf.mxu3 }
 0x21f   : > { %v851_v30 = vadd.f32 %v850_v13, %v790_v29 }
 0x226   : > { %v853_v19 = vpop.f32.mrf.mxu3 }
 0x227   : > { %v854_v44 = vadd.f32 %v853_v19, %v793_v42 }
 0x22e   : > { %v855_v18 = vpop.f32.mrf.mxu3 }
 0x22f   : > { %v856_v48 = vadd.f32 %v855_v18, %v795_v47 }
 0x236   : > { %v858_v20 = vpop.f32.mrf.mxu3 }
 0x23e   : > { %v859_v24 = vpop.f32.mrf.mxu3 }
 0x246   : > { %v912_v27 = vpop.f32.mrf.mxu3 }
 0x247   : > { %v925_v32 = vadd.f32 %v912_v27, %v849_v28 }
 0x249   : > { %v933_v40 = vadd.f32 %v1437_v35, %v925_v32 }
 0x24e   : > { %v914_v38 = vpop.f32.mrf.mxu3 }
 0x24f   : > { %v926_v39 = vadd.f32 %v914_v38, %v851_v30 }
 0x251   : > { %v934_v31 = vadd.f32 %v1437_v35, %v926_v39 }
 0x253   : > { %v1431_v43 = vpack.i.bf16 %v934_v31, %v933_v40 }
 0x255   : > { %1432 = vrot.lane.b32.xlu2 %v1431_v43, %s1503_s29 }
 0x256   : > { %v917_v26 = vpop.f32.mrf.mxu3 }
 0x257   : > { %v927_v49 = vadd.f32 %v917_v26, %v854_v44 }
 0x259   : > { %v935_v52 = vadd.f32 %v1437_v35, %v927_v49 }
 0x25e   : > { %v919_v50 = vpop.f32.mrf.mxu3 }
 0x25f   : > { %v928_v51 = vadd.f32 %v919_v50, %v856_v48 }
 0x261   : > { %v936_v53 = vadd.f32 %v1437_v35, %v928_v51 }
 0x263   : > { %v1421_v54 = vpack.i.bf16 %v936_v53, %v935_v52 }
 0x265   : > { %1422 = vrot.lane.b32.xlu0 %v1421_v54, %s1503_s29  ;;  %s1504_s29 = smov 16  }
 0x266   : > { %v922_v55 = vpop.f32.mrf.mxu3 }
 0x26e   : > { %v923_v34 = vpop.f32.mrf.mxu3 }
 0x2af   : > { %v1433_v3 = vpop.permute.xlu2 %1432 }
 0x2b0   : > { %v1435_v4 = vunpack.i.h.bf16 %v1433_v3  ;;  %v1434_v5 = vunpack.i.l.bf16 %v1433_v3 }
 0x2b2   : > { %v954_v6 = vmax.f32 %v934_v31, %v1435_v4  ;;  %v953_v9 = vmax.f32 %v933_v40, %v1434_v5 }
 0x2b4   : > { %v957_v46 = vmax.f32 %v953_v9, %v954_v6 }
 0x2b6   : > { %v959_v10 = vmax.f32 %v957_v46, 0.0 }
 0x2b8   : > { %v961_v45 = vpack.c.bf16 %v959_v10, %v959_v10 }
 0x2d7   : > { %v1423_v36 = vpop.permute.xlu0 %1422 }
 0x2d8   : > { %v1425_v37 = vunpack.i.h.bf16 %v1423_v36  ;;  %v1424_v57 = vunpack.i.l.bf16 %v1423_v36 }
 0x2da   : > { %v956_v60 = vmax.f32 %v936_v53, %v1425_v37  ;;  %v955_v61 = vmax.f32 %v935_v52, %v1424_v57 }
 0x2dc   : > { %v958_v62 = vmax.f32 %v955_v61, %v956_v60 }
 0x2de   : > { %v960_v63 = vmax.f32 %v958_v62, 0.0 }
 0x2e0   : > { %v962_v0 = vpack.c.bf16 %v960_v63, %v960_v63 }
 0x2e2   : > { %v964_v1 = vunpack.c.l.b16 %v962_v0 }
 0x2e4   : > { %v965_v2 = vpack.c.b16 %v964_v1, %v964_v1 }
 0x2e6   : > { %966 = vrot.lane.b32.xlu0 %v965_v2, %s1504_s29 }
 0x358   : > { %v967_v11 = vpop.permute.xlu0 %966 }
 0x359   : > { %v971_v8 = vsel %vm968_vm3, %v961_v45, %v967_v11 }
 0x35a   : > { %1228 = vmatmul.msk.bf16.vlgmr.msrb.gmra.mxu0 %vm992_vm4, %v971_v8 }
 0x3d7   : > { %v1004_v7 = vpop.f32.mrf.mxu0 }
 0x3d8   : > { %v1005_v13 = vadd.f32 %v1438_v12, %v1004_v7 }
 0x3da   : > { %1009 = vst.msk [vmem:[%s271_s23] sm:$0xff] %vm1008_vm5, %v1005_v13 }
 0x3db   : > { %1466 = shalt.err (!%p1463_p3)
}
 0x3dc   : > { %1350 = dma.vmem_to_hbm [thread:$0]  (%p1583_p5), %s1024_s8, 128, %s1026_s9, %s1011_s28  }
 0x3df   : > { %v1006_v14 = vpop.f32.mrf.mxu0 }
 0x3e0 PF: > { %p1356_p4 = scmp.ge.s32.totalorder %s1501_s27, 2  ;;  %s1037_s15 = sand.u32 1, %s1489_s24  }
 0x3e1   : > { %s1038_s20 = scalar_lea.sflag [#allocation3], %s1037_s15 }
 0x3e2   : > { %p1353_p7 = pnand %p1356_p4, %p1587_p6 }
 0x3e4   : > { %p1354_p8 = pneg %p1353_p7 }
 0x3e6   : > { %1484 = dma.done.wait (%p1354_p8), %s1038_s20, 128  }
 0x3e7   : > { %1486 = vsyncadd (%p1354_p8), %s1038_s20, 4294967168  ;;  %p17_p9 = scmp.ge.s32.totalorder %s1570_s30, 4   ;;  %s1857_s24 = smov %s1493_s25 }
 0x3e8   : > { %s1858_s25 = smov %s1497_s26  ;;  %s1859_s26 = smov %s1581_s10 }
 0x3e9   : > { %s1860_s27 = smov %s1570_s30  ;;  %19 = sbr.rel (!%p17_p9) target bundleno = 3 (0x3), region = 87 }
 0x3ee   :  { %1044 = vsyncpa [#allocation3], 1 }
 0x3ef   :  { %1046 = vsyncpa [#allocation3 + $0x1], 1 }

</bundles_post_ra>
